<compile_context>
chip_gen: v5e
topology: v5e:2x2
jax: 0.10.0
libtpu: 0.0.40
codegen_flags: <defaults>
</compile_context>

<pallas_src>
import functools

import jax
import jax.numpy as jnp
from jax.experimental import pallas as pl
from jax.experimental.pallas import tpu as pltpu


# ---------------------------------------------------------------------------
# Pallas kernel: one fused SAGEConv layer (tiled aggregation + projection)
# ---------------------------------------------------------------------------
def _sageconv_kernel(a_ref, x_ref, wl_ref, wr_ref, b_ref, o_ref, acc_ref, *,
                     activation, f_out, tile_m, tile_k):
    """grid = (row tiles i, reduction tiles k) over the dense mean-adjacency.

    acc[i] = sum_k A[i, k] @ X[k]          (bf16 MXU, f32 accumulate)
    epilogue (k == last):
      h = acc @ W_l + X[i] @ W_r + b ; activation(h) -> o[i]

    X is fully VMEM-resident (constant block index), so both the neighbor
    slice X[k] and the root slice X[i] are cheap in-kernel views.
    """
    i = pl.program_id(0)
    k = pl.program_id(1)

    @pl.when(k == 0)
    def _():
        acc_ref[...] = jnp.zeros_like(acc_ref)

    k_start = pl.multiple_of(k * tile_k, tile_k)
    xk = x_ref[pl.ds(k_start, tile_k), :]                      # [tile_k, F_in_pad] bf16
    acc_ref[...] += jnp.dot(a_ref[...], xk,
                            preferred_element_type=jnp.float32)

    @pl.when(k == pl.num_programs(1) - 1)
    def _():
        i_start = pl.multiple_of(i * tile_m, tile_m)
        xi = x_ref[pl.ds(i_start, tile_m), :]                  # root rows, bf16
        agg = acc_ref[...]                                     # [tile_m, F_in_pad] f32
        h = (jnp.dot(agg.astype(jnp.bfloat16), wl_ref[...],
                     preferred_element_type=jnp.float32)
             + jnp.dot(xi, wr_ref[...],
                       preferred_element_type=jnp.float32)
             + b_ref[...])                                     # [tile_m, F_out_pad] f32

        if activation == "sigmoid":
            # exp on the EUP; the small divide in the epilogue is negligible
            # next to the mem-bound aggregation.
            out = 1.0 / (1.0 + jnp.exp(-h))
        elif activation == "log_softmax":
            # Numerically-stable log_softmax over the real (unpadded) classes.
            lane = jax.lax.broadcasted_iota(jnp.int32, h.shape, 1)
            valid = lane < f_out
            hm = jnp.where(valid, h, -jnp.inf)
            m = jnp.max(hm, axis=1, keepdims=True)
            z = hm - m
            lse = jnp.log(jnp.sum(jnp.where(valid, jnp.exp(z), 0.0),
                                  axis=1, keepdims=True))
            out = jnp.where(valid, z - lse, 0.0)
        else:
            out = h
        o_ref[...] = out.astype(o_ref.dtype)


def _sageconv_call(a, x, w_l, w_r, b, *, activation, f_out, tile_m, tile_k,
                   out_dtype):
    """a: [N_pad,N_pad] bf16 row-normalized adjacency; x: [N_pad,F_in_pad] bf16;
    w_l/w_r: [F_in_pad, F_out_pad] bf16; b: [1, F_out_pad] f32."""
    n_pad = a.shape[0]
    f_in_pad = x.shape[1]
    f_out_pad = w_l.shape[1]
    assert n_pad % tile_m == 0 and n_pad % tile_k == 0
    assert f_in_pad % 128 == 0 and f_out_pad % 128 == 0
    # TODO(synk): for graphs where the resident X no longer fits, fall back to
    # a streamed X[k] BlockSpec or (better) a CSR scalar-prefetch gather.
    assert n_pad * f_in_pad * 2 <= 16 * 1024 * 1024, "X too large for VMEM residency"

    kernel = functools.partial(_sageconv_kernel, activation=activation,
                               f_out=f_out, tile_m=tile_m, tile_k=tile_k)

    out_bytes = jnp.dtype(out_dtype).itemsize
    # VMEM budget: double-buffered A tiles + resident X / weights / bias /
    # output tile + the f32 accumulator scratch, then 2x headroom.
    vmem_bytes = (
        2 * tile_m * tile_k * 2             # A[i,k] blocks (bf16, double-buffered)
        + 2 * n_pad * f_in_pad * 2          # X resident (bf16)
        + 2 * 2 * f_in_pad * f_out_pad * 2  # W_l, W_r (bf16)
        + 2 * 8 * f_out_pad * 4             # bias (f32, sublane-padded)
        + 2 * tile_m * f_out_pad * out_bytes
        + tile_m * f_in_pad * 4             # accumulator scratch
    )
    vmem_limit = int(min(max(2 * vmem_bytes, 32 * 1024 * 1024),
                         64 * 1024 * 1024))

    grid_spec = pltpu.PrefetchScalarGridSpec(
        num_scalar_prefetch=0,
        grid=(n_pad // tile_m, n_pad // tile_k),   # (row tiles, reduction tiles)
        in_specs=[
            pl.BlockSpec((tile_m, tile_k), lambda i, k: (i, k)),        # A[i, k]
            pl.BlockSpec((n_pad, f_in_pad), lambda i, k: (0, 0)),       # X (resident)
            pl.BlockSpec((f_in_pad, f_out_pad), lambda i, k: (0, 0)),   # W_l (resident)
            pl.BlockSpec((f_in_pad, f_out_pad), lambda i, k: (0, 0)),   # W_r (resident)
            pl.BlockSpec((1, f_out_pad), lambda i, k: (0, 0)),          # bias (resident)
        ],
        out_specs=pl.BlockSpec((tile_m, f_out_pad), lambda i, k: (i, 0)),
        scratch_shapes=[pltpu.VMEM((tile_m, f_in_pad), jnp.float32)],
    )
    return pl.pallas_call(
        kernel,
        out_shape=jax.ShapeDtypeStruct((n_pad, f_out_pad), out_dtype),
        grid_spec=grid_spec,
        compiler_params=pltpu.CompilerParams(
            # Row tiles shard across TensorCores (v7x); reduction stays serial.
            dimension_semantics=("parallel", "arbitrary"),
            vmem_limit_bytes=vmem_limit,
        ),
    )(a, x, w_l, w_r, b)


# ---------------------------------------------------------------------------
# Plain-JAX glue: adjacency construction, padding, tile selection, params
# ---------------------------------------------------------------------------
def _round_up(v, m):
    return (v + m - 1) // m * m


def _pad2(x, rows, cols):
    r, c = x.shape
    return jnp.pad(x, ((0, rows - r), (0, cols - c)))


def _pick_tiles(n_pad):
    """Choose (TILE_M, TILE_K) for the dense aggregation.

    TILE_K as large as possible (<=1024): large DMAs (~85% of HBM roofline vs
    ~29% at 128) and full contraction depth on v6e/v7x MXUs.  TILE_M up to 512
    but always leaving >= 2 row tiles so the 'parallel' axis can be split
    across v7x's 2 TensorCores.
    """
    tile_m = 128
    for cand in (512, 256):
        if n_pad % cand == 0 and n_pad // cand >= 2:
            tile_m = cand
            break
    tile_k = 128
    for cand in (1024, 512, 256):
        if n_pad % cand == 0:
            tile_k = cand
            break
    return tile_m, tile_k


def build_mean_adjacency(edge_index, num_nodes):
    """A[i, j] = 1/deg_in(i) for every edge j -> i (PyG mean aggregation)."""
    src = edge_index[0]
    dst = edge_index[1]
    a = jnp.zeros((num_nodes, num_nodes), jnp.float32).at[dst, src].add(1.0)
    deg = jnp.sum(a, axis=1, keepdims=True)
    return a / jnp.maximum(deg, 1.0)


def init_sage_params(key, f_in, f_out):
    """Deterministic uniform(-1/sqrt(f_in), 1/sqrt(f_in)) init (PyTorch-Linear-like)."""
    k1, k2, k3 = jax.random.split(key, 3)
    bound = 1.0 / jnp.sqrt(jnp.float32(f_in))
    w_l = jax.random.uniform(k1, (f_in, f_out), jnp.float32, -bound, bound)
    w_r = jax.random.uniform(k2, (f_in, f_out), jnp.float32, -bound, bound)
    b = jax.random.uniform(k3, (1, f_out), jnp.float32, -bound, bound)
    return w_l, w_r, b


def graphsage_forward(x, edge_index, params, *, tile_m=None, tile_k=None):
    (w_l1, w_r1, b1), (w_l2, w_r2, b2) = params
    n, f_in = x.shape
    hidden = w_l1.shape[1]
    n_classes = w_l2.shape[1]

    n_pad = _round_up(n, 128)
    f_in_pad = _round_up(f_in, 128)
    hid_pad = _round_up(hidden, 128)
    cls_pad = _round_up(n_classes, 128)

    auto_m, auto_k = _pick_tiles(n_pad)
    tm = tile_m or auto_m
    tk = tile_k or auto_k
    assert n_pad % tm == 0 and n_pad % tk == 0

    # bf16 MXU operands (zero-padded to lane-dense shapes); f32 accumulation
    # happens inside the kernel.
    # TODO(synk): for large sparse graphs replace the dense N x N adjacency with a
    # scalar-prefetch (CSR / block-table) gather so cost scales with |E|, not N^2.
    a = build_mean_adjacency(edge_index, n)
    a_bf = _pad2(a, n_pad, n_pad).astype(jnp.bfloat16)
    x_bf = _pad2(x, n_pad, f_in_pad).astype(jnp.bfloat16)

    wl1 = _pad2(w_l1, f_in_pad, hid_pad).astype(jnp.bfloat16)
    wr1 = _pad2(w_r1, f_in_pad, hid_pad).astype(jnp.bfloat16)
    b1p = _pad2(b1, 1, hid_pad)                                     # f32

    # Layer 1 emits bf16 directly: halves the writeback and removes the XLA
    # f32->bf16 cast pass between the two pallas_calls.
    h = _sageconv_call(a_bf, x_bf, wl1, wr1, b1p,
                       activation="sigmoid", f_out=hidden,
                       tile_m=tm, tile_k=tk, out_dtype=jnp.bfloat16)

    # TODO(synk): F.dropout(training=self.training) — identity in eval mode;
    # training-mode stochastic dropout (pltpu.prng_random_bits) not emitted here.

    wl2 = _pad2(w_l2, hid_pad, cls_pad).astype(jnp.bfloat16)
    wr2 = _pad2(w_r2, hid_pad, cls_pad).astype(jnp.bfloat16)
    b2p = _pad2(b2, 1, cls_pad)                                     # f32

    out = _sageconv_call(a_bf, h, wl2, wr2, b2p,
                         activation="log_softmax", f_out=n_classes,
                         tile_m=tm, tile_k=tk, out_dtype=jnp.float32)
    return out[:n, :n_classes]


def graphsage_reference(x, edge_index, params):
    """Pure-JAX f32 reference for correctness checking."""
    (w_l1, w_r1, b1), (w_l2, w_r2, b2) = params
    a = build_mean_adjacency(edge_index, x.shape[0])
    h = jax.nn.sigmoid(a @ x @ w_l1 + x @ w_r1 + b1)
    z = a @ h @ w_l2 + h @ w_r2 + b2
    return jax.nn.log_softmax(z, axis=1)


# ---------------------------------------------------------------------------
if __name__ == "__main__":
    NUM_NODES = 256           # n_pad=256 -> 2 row tiles of 128, 1 reduction tile of 256
    NUM_NODE_FEATURES = 8
    NUM_CLASSES = 4
    NUM_EDGES = 1024
    HIDDEN = 16

    key = jax.random.PRNGKey(0)
    k_x, k_e, k_p1, k_p2 = jax.random.split(key, 4)

    x = jax.random.normal(k_x, (NUM_NODES, NUM_NODE_FEATURES), jnp.float32)
    edge_index = jax.random.randint(k_e, (2, NUM_EDGES), 0, NUM_NODES, jnp.int32)

    params = (
        init_sage_params(k_p1, NUM_NODE_FEATURES, HIDDEN),
        init_sage_params(k_p2, HIDDEN, NUM_CLASSES),
    )

    out = graphsage_forward(x, edge_index, params)
    jax.block_until_ready(out)
    assert out.shape == (NUM_NODES, NUM_CLASSES)

    # log_softmax rows sum to ~1 in prob space
    row_sums = jnp.sum(jnp.exp(out), axis=1)
    assert bool(jnp.all(jnp.abs(row_sums - 1.0) < 1e-3))

    # loose check vs an f32 pure-JAX reference (kernel uses bf16 MXU operands)
    ref = graphsage_reference(x, edge_index, params)
    max_err = float(jnp.max(jnp.abs(out - ref)))
    assert max_err < 0.15, f"max abs err vs f32 reference = {max_err}"

    # Also exercise the multi-step reduction (accumulator) path with small tiles.
    out_small = graphsage_forward(x, edge_index, params, tile_m=128, tile_k=128)
    jax.block_until_ready(out_small)
    max_err_small = float(jnp.max(jnp.abs(out_small - ref)))
    assert max_err_small < 0.15, f"max abs err (128x128 tiles) = {max_err_small}"

    print("KERNEL_OK")
</pallas_src>

<mosaic_0001>
module attributes {stable_mosaic.version = 11 : i64} {
  func.func @_sageconv_kernel(%arg0: i32, %arg1: i32, %arg2: memref<128x256xbf16, #tpu.memory_space<vmem>>, %arg3: memref<256x128xbf16, #tpu.memory_space<vmem>>, %arg4: memref<128x128xbf16, #tpu.memory_space<vmem>>, %arg5: memref<128x128xbf16, #tpu.memory_space<vmem>>, %arg6: memref<1x128xf32, #tpu.memory_space<vmem>>, %arg7: memref<128x128xbf16, #tpu.memory_space<vmem>>, %arg8: memref<128x128xf32, #tpu.memory_space<vmem>>) attributes {dimension_semantics = [#tpu.dimension_semantics<parallel>, #tpu.dimension_semantics<arbitrary>], iteration_bounds = array<i64: 2, 1>, scalar_prefetch = 0 : i64, scratch_operands = 1 : i64, tpu.core_type = #tpu.core_type<tc>, window_params = [{transform_indices = @transform_0, window_bounds = array<i64: 128, 256>}, {pipeline_mode = #tpu.pipeline_mode<synchronous>, transform_indices = @transform_1, window_bounds = array<i64: 256, 128>}, {pipeline_mode = #tpu.pipeline_mode<synchronous>, transform_indices = @transform_2, window_bounds = array<i64: 128, 128>}, {pipeline_mode = #tpu.pipeline_mode<synchronous>, transform_indices = @transform_3, window_bounds = array<i64: 128, 128>}, {pipeline_mode = #tpu.pipeline_mode<synchronous>, transform_indices = @transform_4, window_bounds = array<i64: 1, 128>}, {transform_indices = @transform_5, window_bounds = array<i64: 128, 128>}]} {
    %c0_i32 = arith.constant 0 : i32
    %0 = arith.cmpi eq, %arg1, %c0_i32 : i32
    %1 = arith.extui %0 : i1 to i32
    %c0_i32_0 = arith.constant 0 : i32
    %2 = arith.cmpi ne, %1, %c0_i32_0 : i32
    scf.if %2 {
      %cst_9 = arith.constant 0.000000e+00 : f32
      %15 = vector.broadcast %cst_9 : f32 to vector<128x128xf32>
      %c0_10 = arith.constant 0 : index
      %c0_11 = arith.constant 0 : index
      %16 = vector.load %arg8[%c0_10, %c0_11] : memref<128x128xf32, #tpu.memory_space<vmem>>, vector<128x128xf32>
      tpu.vector_store %arg8[%c0_10, %c0_11], %15 {strides = array<i32>} : memref<128x128xf32, #tpu.memory_space<vmem>>, vector<128x128xf32>,
    } else {
    }
    %c256_i32 = arith.constant 256 : i32
    %3 = arith.muli %arg1, %c256_i32 : i32
    %4 = tpu.assume_multiple %3, 256 : i32
    %5 = arith.index_cast %4 : i32 to index
    %c0 = arith.constant 0 : index
    %6 = vector.load %arg3[%5, %c0] : memref<256x128xbf16, #tpu.memory_space<vmem>>, vector<256x128xbf16>
    %c0_1 = arith.constant 0 : index
    %c0_2 = arith.constant 0 : index
    %7 = vector.load %arg8[%c0_1, %c0_2] : memref<128x128xf32, #tpu.memory_space<vmem>>, vector<128x128xf32>
    %c0_3 = arith.constant 0 : index
    %c0_4 = arith.constant 0 : index
    %8 = vector.load %arg2[%c0_3, %c0_4] : memref<128x256xbf16, #tpu.memory_space<vmem>>, vector<128x256xbf16>
    %cst = arith.constant dense<0.000000e+00> : vector<128x128xf32>
    %9 = tpu.matmul %8, %6, %cst {dimension_numbers = #tpu.dot_dimension_numbers<[1], [0], [0], [1], [0, 0, 1, 1], [], []>} : vector<128x256xbf16>, vector<256x128xbf16>, vector<128x128xf32> -> vector<128x128xf32>
    %10 = arith.addf %7, %9 : vector<128x128xf32>
    %c0_5 = arith.constant 0 : index
    %c0_6 = arith.constant 0 : index
    %11 = vector.load %arg8[%c0_5, %c0_6] : memref<128x128xf32, #tpu.memory_space<vmem>>, vector<128x128xf32>
    tpu.vector_store %arg8[%c0_5, %c0_6], %10 {strides = array<i32>} : memref<128x128xf32, #tpu.memory_space<vmem>>, vector<128x128xf32>,
    %c0_i32_7 = arith.constant 0 : i32
    %12 = arith.cmpi eq, %arg1, %c0_i32_7 : i32
    %13 = arith.extui %12 : i1 to i32
    %c0_i32_8 = arith.constant 0 : i32
    %14 = arith.cmpi ne, %13, %c0_i32_8 : i32
    scf.if %14 {
      %c128_i32 = arith.constant 128 : i32
      %15 = arith.muli %arg0, %c128_i32 : i32
      %16 = tpu.assume_multiple %15, 128 : i32
      %17 = arith.index_cast %16 : i32 to index
      %c0_9 = arith.constant 0 : index
      %18 = vector.load %arg3[%17, %c0_9] : memref<256x128xbf16, #tpu.memory_space<vmem>>, vector<128x128xbf16>
      %c0_10 = arith.constant 0 : index
      %c0_11 = arith.constant 0 : index
      %19 = vector.load %arg8[%c0_10, %c0_11] : memref<128x128xf32, #tpu.memory_space<vmem>>, vector<128x128xf32>
      %20 = arith.truncf %19 : vector<128x128xf32> to vector<128x128xbf16>
      %c0_12 = arith.constant 0 : index
      %c0_13 = arith.constant 0 : index
      %21 = vector.load %arg4[%c0_12, %c0_13] : memref<128x128xbf16, #tpu.memory_space<vmem>>, vector<128x128xbf16>
      %cst_14 = arith.constant dense<0.000000e+00> : vector<128x128xf32>
      %22 = tpu.matmul %20, %21, %cst_14 {dimension_numbers = #tpu.dot_dimension_numbers<[1], [0], [0], [1], [0, 0, 1, 1], [], []>} : vector<128x128xbf16>, vector<128x128xbf16>, vector<128x128xf32> -> vector<128x128xf32>
      %c0_15 = arith.constant 0 : index
      %c0_16 = arith.constant 0 : index
      %23 = vector.load %arg5[%c0_15, %c0_16] : memref<128x128xbf16, #tpu.memory_space<vmem>>, vector<128x128xbf16>
      %cst_17 = arith.constant dense<0.000000e+00> : vector<128x128xf32>
      %24 = tpu.matmul %18, %23, %cst_17 {dimension_numbers = #tpu.dot_dimension_numbers<[1], [0], [0], [1], [0, 0, 1, 1], [], []>} : vector<128x128xbf16>, vector<128x128xbf16>, vector<128x128xf32> -> vector<128x128xf32>
      %25 = arith.addf %22, %24 : vector<128x128xf32>
      %c0_18 = arith.constant 0 : index
      %c0_19 = arith.constant 0 : index
      %26 = vector.load %arg6[%c0_18, %c0_19] : memref<1x128xf32, #tpu.memory_space<vmem>>, vector<1x128xf32>
      %27 = vector.broadcast %26 : vector<1x128xf32> to vector<128x128xf32>
      %28 = arith.addf %25, %27 : vector<128x128xf32>
      %cst_20 = arith.constant 0.000000e+00 : f32
      %29 = vector.broadcast %cst_20 : f32 to vector<128x128xf32>
      %30 = arith.subf %29, %28 : vector<128x128xf32>
      %31 = math.exp %30 : vector<128x128xf32>
      %cst_21 = arith.constant 1.000000e+00 : f32
      %32 = vector.broadcast %cst_21 : f32 to vector<128x128xf32>
      %33 = arith.addf %32, %31 : vector<128x128xf32>
      %cst_22 = arith.constant 1.000000e+00 : f32
      %34 = vector.broadcast %cst_22 : f32 to vector<128x128xf32>
      %35 = arith.divf %34, %33 : vector<128x128xf32>
      %36 = arith.truncf %35 : vector<128x128xf32> to vector<128x128xbf16>
      %c0_23 = arith.constant 0 : index
      %c0_24 = arith.constant 0 : index
      %37 = vector.load %arg7[%c0_23, %c0_24] : memref<128x128xbf16, #tpu.memory_space<vmem>>, vector<128x128xbf16>
      tpu.vector_store %arg7[%c0_23, %c0_24], %36 {strides = array<i32>} : memref<128x128xbf16, #tpu.memory_space<vmem>>, vector<128x128xbf16>,
    } else {
    }
    return
  }
  func.func @transform_0(%arg0: i32, %arg1: i32) -> (i32, i32) {
    %c0_i32 = arith.constant 0 : i32
    return %arg0, %arg1 : i32, i32
  }
  func.func @transform_1(%arg0: i32, %arg1: i32) -> (i32, i32) {
    %c0_i32 = arith.constant 0 : i32
    %c0_i32_0 = arith.constant 0 : i32
    %c0_i32_1 = arith.constant 0 : i32
    return %c0_i32, %c0_i32_0 : i32, i32
  }
  func.func @transform_2(%arg0: i32, %arg1: i32) -> (i32, i32) {
    %c0_i32 = arith.constant 0 : i32
    %c0_i32_0 = arith.constant 0 : i32
    %c0_i32_1 = arith.constant 0 : i32
    return %c0_i32, %c0_i32_0 : i32, i32
  }
  func.func @transform_3(%arg0: i32, %arg1: i32) -> (i32, i32) {
    %c0_i32 = arith.constant 0 : i32
    %c0_i32_0 = arith.constant 0 : i32
    %c0_i32_1 = arith.constant 0 : i32
    return %c0_i32, %c0_i32_0 : i32, i32
  }
  func.func @transform_4(%arg0: i32, %arg1: i32) -> (i32, i32) {
    %c0_i32 = arith.constant 0 : i32
    %c0_i32_0 = arith.constant 0 : i32
    %c0_i32_1 = arith.constant 0 : i32
    return %c0_i32, %c0_i32_0 : i32, i32
  }
  func.func @transform_5(%arg0: i32, %arg1: i32) -> (i32, i32) {
    %c0_i32 = arith.constant 0 : i32
    %c0_i32_0 = arith.constant 0 : i32
    return %arg0, %c0_i32 : i32, i32
  }
}

</mosaic_0001>

<bundles_post_ra>
// kernel: tpu_custom_call.1
= control target key start
LH: loop header
LB: loop body
LE: loop exit
PB: predicated region body
PF: predicated region fallthrough
CT: control target
= control target key end

     0   :  { %s2643_s0 = inlined_call_operand.hbm [shape: bf16[256,256], index: 0, kind: input, shape index: {}]   ;;  %s2644_s1 = inlined_call_operand.hbm [shape: bf16[256,128], index: 1, kind: input, shape index: {}]   ;;  %s2645_s2 = inlined_call_operand.hbm [shape: bf16[128,128], index: 2, kind: input, shape index: {}]   ;;  %s2646_s3 = inlined_call_operand.hbm [shape: bf16[128,128], index: 3, kind: input, shape index: {}]   ;;  %s2647_s4 = inlined_call_operand.vmem [shape: f32[1,128], index: 4, kind: input, shape index: {}]   ;;  %s2648_s5 = inlined_call_operand.hbm [shape: bf16[256,128], index: 5, kind: output, shape index: {}]  }
   0x1   :  { %2649 = sst [smem:[#allocation16_spill]] %s2644_s1 }
   0x2   :  { %2650 = sst [smem:[#allocation17_spill]] %s2645_s2 }
   0x3   :  { %2651 = sst [smem:[#allocation18_spill]] %s2646_s3 }
   0x4   :  { %10 = vsyncpa [#allocation4], 0 }
   0x5   :  { %12 = vsyncpa [#allocation4 + $0x1], 0 }
   0x6   :  { %13 = vsyncpa [#allocation7], 0 }
   0x7   :  { %14 = vsyncpa [#allocation10], 0 }
   0x8   :  { %15 = vsyncpa [#allocation5], 0 }
   0x9   :  { %17 = vsyncpa [#allocation5 + $0x1], 0  ;;  %s2290_s18 = smov 0   ;;  %s2292_s19 = smov 0  }
   0xa   :  { %s2294_s20 = smov 0   ;;  %s2296_s21 = smov 0  }
   0xb   :  { %s2298_s22 = smov 0   ;;  %s2300_s23 = smov 0  }
   0xc LB: > { %s1521_s24 = sadd.s32 4294967295, %s2249_s23   ;;  %s1522_s25 = sadd.s32 4294967294, %s2249_s23   ;;  %s2249_s23 = sphi %s2300_s23, %s23_s23   ;;  %s2245_s22 = sphi %s2298_s22, %s2677_s22   ;;  %s2241_s21 = sphi %s2296_s21, %s2676_s21   ;;  %s2237_s20 = sphi %s2294_s20, %s2675_s20   ;;  %s2233_s19 = sphi %s2292_s19, %s2674_s19   ;;  %s2229_s18 = sphi %s2290_s18, %s2673_s18  }
   0xd   : > { %p57_p0 = scmp.ne.s32.totalorder %s2233_s19, %s2229_s18  ;;  %p2324_p1 = scmp.eq.s32.totalorder %s1521_s24, 0 }
   0xe   : > { %p2328_p2 = scmp.eq.s32.totalorder %s1521_s24, 1  ;;  %p171_p3 = scmp.eq.s32.totalorder %s1522_s25, 1 }
   0xf   : > { %p2334_p4 = por %p2324_p1, %p57_p0  ;;  %p1523_p5 = scmp.ge.s32.totalorder %s2249_s23, 1 }
  0x10   : > { %p2339_p6 = por %p171_p3, %p57_p0  ;;  %p178_p7 = scmp.lt.s32.totalorder %s2249_s23, 3 }
  0x11   : > { %s2656_s1 = sld [smem:[#allocation16_spill]]  ;;  %s2251_s9 = smov [#allocation6]  }
  0x12   : > { %p2347_p8 = pnand %p1523_p5, %p178_p7  ;;  %s191_s10 = sshll.u32 %s2251_s9, 4  ;;  %s192_s10 = int_to_ptr.vmem [resolvable:$true] %s191_s10 }
  0x13   : > { %p1527_p11 = scmp.ge.s32.totalorder %s2249_s23, 2  ;;  %s2659_s2 = sld [smem:[#allocation17_spill]] }
  0x14   : > { %p1891_p9 = pneg %p2347_p8  ;;  %s2252_s15 = smov 64  }
  0x15   : > { %s2253_s16 = smov 4   ;;  %s2254_s17 = smov [#allocation8]  }
  0x16   : > { %p2355_p10 = pnand %p1891_p9, %p2324_p1  ;;  %s205_s24 = sshll.u32 %s2254_s17, 4  ;;  %s206_s24 = int_to_ptr.vmem [resolvable:$true] %s205_s24 }
  0x17   : > { %s189_s7 = sshll.u32 %s2656_s1, 4  ;;  %s2660_s3 = sld [smem:[#allocation18_spill]]  ;;  %s190_s7 = int_to_ptr.hbm [resolvable:$true] %s189_s7 }
  0x18   : > { %1894 = dma.hbm_to_vmem [thread:$0]  (!%p2355_p10), %s190_s7, 2048, %s192_s10, [#allocation7], %s2252_s15, %s2252_s15, %s2253_s16  }
  0x19   : > { %s203_s14 = sshll.u32 %s2659_s2, 4  ;;  %s2255_s9 = smov [#allocation9]   ;;  %s204_s14 = int_to_ptr.hbm [resolvable:$true] %s203_s14 }
  0x1a   : > { %1897 = dma.hbm_to_vmem [thread:$0]  (!%p2355_p10), %s204_s14, 1024, %s206_s24, [#allocation7], %s2252_s15, %s2252_s15, %s2253_s16  }
  0x1b   : > { %s219_s12 = sshll.u32 %s2255_s9, 4  ;;  %s35_s7 = sadd.s32 1, %s2245_s22  ;;  %s220_s12 = int_to_ptr.vmem [resolvable:$true] %s219_s12 }
  0x1c   : > { %p37_p12 = scmp.ge.s32.totalorder %s35_s7, 2  ;;  %s44_s10 = sadd.s32 1, %s2237_s20 }
  0x1d   : > { %s217_s6 = sshll.u32 %s2660_s3, 4  ;;  %p51_p13 = scmp.ne.s32.totalorder %s2237_s20, %s2233_s19  ;;  %s218_s6 = int_to_ptr.hbm [resolvable:$true] %s217_s6 }
  0x1e   : > { %1900 = dma.hbm_to_vmem [thread:$0]  (!%p2355_p10), %s218_s6, 1024, %s220_s12, [#allocation10], %s2252_s15, %s2252_s15, %s2253_s16  }
  0x1f   : > { %p52_p0 = scmp.eq.s32.totalorder %s2249_s23, 0  ;;  %s2679_s7 = smov (%p37_p12, %s35_s7), 0 }
  0x20   : > { %p2385_p5 = por %p2328_p2, %p51_p13  ;;  %s39_s11 = ssub.s32 %s2245_s22, %s2679_s7 }
  0x21   : > { %p2379_p3 = por %p52_p0, %p51_p13  ;;  %p1912_p7 = scmp.lt.s32.totalorder %s2249_s23, 2 }
  0x22   : > { %p42_p9 = scmp.eq.s32.totalorder %s39_s11, 0  ;;  %s236_s15 = sand.u32 1, %s2237_s20  }
  0x23   : > { %s1528_s16 = sshll.u32 %s236_s15, 7  ;;  %s1770_s24 = sshll.u32 %s2245_s22, 7 }
  0x24   : > { %s2394_s17 = scalar_select %p42_p9, %s2237_s20, %s44_s10  }
  0x25   : > { %s248_s6 = scalar_lea.hbm %s2643_s0, %s1770_s24  ;;  %s240_s9 = scalar_lea.vmem [#allocation3], %s1528_s16 }
  0x26   : > { %s251_s12 = sshll.u32 %s240_s9, 4  ;;  %s249_s27 = sshll.u32 %s248_s6, 4  ;;  %s252_s12 = int_to_ptr.vmem [resolvable:$true] %s251_s12  ;;  %s250_s27 = int_to_ptr.hbm [resolvable:$true] %s249_s27 }
  0x27   : > { %p1902_p2 = pnand %p1912_p7, %p2379_p3  ;;  %s237_s1 = scalar_lea.sflag [#allocation4], %s236_s15 }
  0x28   : > { %s2256_s2 = smov 128   ;;  %s2257_s3 = smov 8  }
  0x29   : > { %1904 = dma.hbm_to_vmem [thread:$0]  (!%p1902_p2), %s250_s27, 2048, %s252_s12, %s237_s1, %s2256_s2, %s2256_s2, %s2257_s3  }
  0x2a   : > { %263 = sbr.rel (%p2347_p8) target bundleno = 517 (0x205), region = 40  ;;  %s2405_s10 = sand.u32 (!%p2347_p8), 1, %s2233_s19  }
  0x2b   : > { %s1533_s11 = sshll.u32 (!%p2347_p8), %s2405_s10, 7  ;;  %s266_s16 = scalar_lea.sflag (!%p2347_p8), [#allocation4], %s2405_s10 }
  0x2c   : > { %s2409_s24 = scalar_lea.vmem (!%p2347_p8), [#allocation3], %s1533_s11 }
  0x2f   : > { %2212 = dma.done.wait (%p2334_p4), %s266_s16, 2048  }
  0x30   : > { %2214 = vsyncadd (%p2334_p4), %s266_s16, 4294965248 }
  0x31   : > { %2216 = dma.done.wait (%p2324_p1), [#allocation7], 3072  }
  0x32   : > { %2218 = vsyncadd (%p2324_p1), [#allocation7], 4294964224 }
  0x33   : > { %2220 = dma.done.wait (%p2324_p1), [#allocation10], 1024  }
  0x34   : > { %2222 = vsyncadd (%p2324_p1), [#allocation10], 4294966272  ;;  %v1778_v0 = vld [vmem:[#allocation6 + $0x38] sm:$0xff]  ;;  %v1777_v2 = vld [vmem:[#allocation6 + $0x30] sm:$0xff]  ;;  %s1666_s1 = sshll.u32 %s2241_s21, 7  ;;  %s1537_s13 = sshll.u32 %s2405_s10, 6 }
  0x35   : > { %v1786_v1 = vld [vmem:[#allocation6 + $0x78] sm:$0xff]  ;;  %580 = vmatpush.bf16.msra.mxu0 %v1778_v0  ;;  %v1785_v3 = vld [vmem:[#allocation6 + $0x70] sm:$0xff]  ;;  %v1776_v4 = vld [vmem:[#allocation6 + $0x28] sm:$0xff]  ;;  %s714_s2 = sshra.s32 %s1666_s1, 3  ;;  %s2490_s15 = scalar_lea.vmem [#allocation11], %s1537_s13 }
  0x36   : > { %629 = vmatpush.bf16.msra.mxu1 %v1786_v1  ;;  %v1784_v5 = vld [vmem:[#allocation6 + $0x68] sm:$0xff]  ;;  %v1775_v6 = vld [vmem:[#allocation6 + $0x20] sm:$0xff]  ;;  %v1774_v8 = vld [vmem:[#allocation6 + $0x18] sm:$0xff]  ;;  %s1667_s3 = sshll.u32 %s714_s2, 2  ;;  %s1827_s25 = sshll.u32 %s2241_s21, 6 }
  0x37   : > { %v1783_v7 = vld [vmem:[#allocation6 + $0x60] sm:$0xff]  ;;  %v1782_v9 = vld [vmem:[#allocation6 + $0x58] sm:$0xff]  ;;  %v1773_v10 = vld [vmem:[#allocation6 + $0x10] sm:$0xff]  ;;  %s2452_s26 = scalar_lea.vmem [#allocation6], %s1667_s3  ;;  %s1400_s9 = scalar_lea.hbm %s2648_s5, %s1827_s25 }
  0x38   : > { %v1781_v11 = vld [vmem:[#allocation6 + $0x50] sm:$0xff]  ;;  %v1772_v12 = vld [vmem:[#allocation6 + $0x8] sm:$0xff]  ;;  %v1771_v14 = vld [vmem:[#allocation6] sm:$0xff]  ;;  %s1401_s21 = sshll.u32 %s2490_s15, 4  ;;  %s1403_s12 = sshll.u32 %s1400_s9, 4  ;;  %s1402_s21 = int_to_ptr.vmem [resolvable:$true] %s1401_s21  ;;  %s1404_s12 = int_to_ptr.hbm [resolvable:$true] %s1403_s12 }
  0x39   : > { %581 = vmatpush.bf16.msra.mxu0 %v1777_v2  ;;  %v1780_v13 = vld [vmem:[#allocation6 + $0x48] sm:$0xff]  ;;  %v1779_v15 = vld [vmem:[#allocation6 + $0x40] sm:$0xff]  ;;  %v1548_v22 = vld [vmem:[%s2409_s24 + $0x10] sm:$0xf]  ;;  %s1389_s27 = scalar_lea.sflag [#allocation5], %s2405_s10  ;;  %s2173_s11 = sshra.s32 %s1404_s12, 4  ;;  %s2174_s11 = int_to_ptr.hbm [resolvable:$true] %s2173_s11 }
  0x3a   : > { %630 = vmatpush.bf16.msra.mxu1 %v1785_v3  ;;  %v1540_v16 = vld [vmem:[%s2409_s24] sm:$0xf]  ;;  %v1788_v17 = vld [vmem:[%s2409_s24 + $0x4] sm:$0xf0]  ;;  %v1787_v18 = vld [vmem:[%s2409_s24 + $0x4] sm:$0xf]  ;;  %p2180_p10 = scmp.lt.s32.totalorder %s2174_s11, %s2648_s5 }
  0x3b   : > { %v1542_v19 = vld [vmem:[%s2409_s24 + $0x8] sm:$0xf0]  ;;  %v1541_v20 = vor.u32 %v1788_v17, %v1540_v16  ;;  %v1790_v23 = vld [vmem:[%s2409_s24 + $0x14] sm:$0xf0]  ;;  %v1789_v24 = vld [vmem:[%s2409_s24 + $0x14] sm:$0xf] }
  0x3c   : > { %v1545_v21 = vor.u32 %v1787_v18, %v1542_v19  ;;  %v1550_v25 = vld [vmem:[%s2409_s24 + $0x18] sm:$0xf0]  ;;  %v1549_v26 = vor.u32 %v1790_v23, %v1548_v22  ;;  %v1556_v28 = vld [vmem:[%s2409_s24 + $0x20] sm:$0xf]  ;;  %v1792_v29 = vld [vmem:[%s2409_s24 + $0x24] sm:$0xf0] }
  0x3d   : > { %582 = vmatpush.bf16.msra.mxu0 %v1776_v4  ;;  %v1553_v27 = vor.u32 %v1789_v24, %v1550_v25  ;;  %v1791_v30 = vld [vmem:[%s2409_s24 + $0x24] sm:$0xf]  ;;  %v1558_v31 = vld [vmem:[%s2409_s24 + $0x28] sm:$0xf0]  ;;  %v1557_v32 = vor.u32 %v1792_v29, %v1556_v28  ;;  %v1564_v34 = vld [vmem:[%s2409_s24 + $0x30] sm:$0xf] }
  0x3e   : > { %631 = vmatpush.bf16.msra.mxu1 %v1784_v5  ;;  %v1561_v33 = vor.u32 %v1791_v30, %v1558_v31  ;;  %v1794_v35 = vld [vmem:[%s2409_s24 + $0x34] sm:$0xf0]  ;;  %v1793_v36 = vld [vmem:[%s2409_s24 + $0x34] sm:$0xf]  ;;  %v1566_v37 = vld [vmem:[%s2409_s24 + $0x38] sm:$0xf0] }
  0x3f   : > { %v1565_v38 = vor.u32 %v1794_v35, %v1564_v34  ;;  %v1569_v39 = vor.u32 %v1793_v36, %v1566_v37  ;;  %v1572_v40 = vld [vmem:[%s2409_s24 + $0x40] sm:$0xf]  ;;  %v1796_v41 = vld [vmem:[%s2409_s24 + $0x44] sm:$0xf0]  ;;  %v1795_v42 = vld [vmem:[%s2409_s24 + $0x44] sm:$0xf] }
  0x40   : > { %v1574_v43 = vld [vmem:[%s2409_s24 + $0x48] sm:$0xf0]  ;;  %v1573_v44 = vor.u32 %v1796_v41, %v1572_v40  ;;  %v1826_v46 = vld [vmem:[#allocation9 + $0x38] sm:$0xff]  ;;  %v1825_v48 = vld [vmem:[#allocation9 + $0x30] sm:$0xff]  ;;  %s2175_s16 = scalar_lea.hbm %s2174_s11, 64  ;;  %s2179_s2 = scalar_lea.hbm %s2648_s5, 128 }
  0x41   : > { %583 = vmatpush.bf16.msra.mxu0 %v1775_v6  ;;  %v1577_v45 = vor.u32 %v1795_v42, %v1574_v43  ;;  %v1818_v47 = vld [vmem:[#allocation8 + $0x38] sm:$0xff]  ;;  %886 = vmatpush.bf16.msra.mxu2 %v1826_v46  ;;  %v1817_v49 = vld [vmem:[#allocation8 + $0x30] sm:$0xff]  ;;  %v1824_v50 = vld [vmem:[#allocation9 + $0x28] sm:$0xff]  ;;  %p2176_p1 = scmp.ne.s32.totalorder %s2174_s11, %s2175_s16  ;;  %p2181_p12 = scmp.lt.s32.totalorder %s2179_s2, %s2175_s16 }
  0x42   : > { %632 = vmatpush.bf16.msra.mxu1 %v1783_v7  ;;  %983 = vmatpush.bf16.msra.mxu3 %v1818_v47  ;;  %v1580_v51 = vld [vmem:[%s2409_s24 + $0x50] sm:$0xf]  ;;  %v1798_v52 = vld [vmem:[%s2409_s24 + $0x54] sm:$0xf0]  ;;  %v1797_v53 = vld [vmem:[%s2409_s24 + $0x54] sm:$0xf] }
  0x43   : > { %v1582_v54 = vld [vmem:[%s2409_s24 + $0x58] sm:$0xf0]  ;;  %v1823_v55 = vld [vmem:[#allocation9 + $0x20] sm:$0xff]  ;;  %v1581_v56 = vor.u32 %v1798_v52, %v1580_v51  ;;  %v1816_v59 = vld [vmem:[#allocation8 + $0x28] sm:$0xff]  ;;  %p2177_p4 = pnand %p2176_p1, %p2385_p5  ;;  %p2182_p13 = por %p2181_p12, %p2180_p10 }
  0x44   : > { %v1585_v57 = vor.u32 %v1797_v53, %v1582_v54  ;;  %v1822_v58 = vld [vmem:[#allocation9 + $0x18] sm:$0xff]  ;;  %v1821_v60 = vld [vmem:[#allocation9 + $0x10] sm:$0xff]  ;;  %v1815_v61 = vld [vmem:[#allocation8 + $0x20] sm:$0xff] }
  0x45   : > { %584 = vmatpush.bf16.msra.mxu0 %v1774_v8  ;;  %887 = vmatpush.bf16.msra.mxu2 %v1825_v48  ;;  %v1820_v62 = vld [vmem:[#allocation9 + $0x8] sm:$0xff]  ;;  %v1814_v63 = vld [vmem:[#allocation8 + $0x18] sm:$0xff]  ;;  %v1588_v0 = vld [vmem:[%s2409_s24 + $0x60] sm:$0xf]  ;;  %p2178_p8 = pneg %p2177_p4 }
  0x46   : > { %633 = vmatpush.bf16.msra.mxu1 %v1782_v9  ;;  %984 = vmatpush.bf16.msra.mxu3 %v1817_v49  ;;  %v1800_v1 = vld [vmem:[%s2409_s24 + $0x64] sm:$0xf0]  ;;  %v1799_v2 = vld [vmem:[%s2409_s24 + $0x64] sm:$0xf]  ;;  %v1590_v3 = vld [vmem:[%s2409_s24 + $0x68] sm:$0xf0] }
  0x47   : > { %v1589_v4 = vor.u32 %v1800_v1, %v1588_v0  ;;  %v1593_v5 = vor.u32 %v1799_v2, %v1590_v3  ;;  %v1819_v6 = vld [vmem:[#allocation9] sm:$0xff]  ;;  %v1813_v7 = vld [vmem:[#allocation8 + $0x10] sm:$0xff]  ;;  %v1812_v9 = vld [vmem:[#allocation8 + $0x8] sm:$0xff]  ;;  %p2183_p0 = pnand %p2182_p13, %p2178_p8 }
  0x48   : > { %v1803_v8 = vld [vmem:[%s2452_s26] sm:$0xff]  ;;  %v1804_v17 = vld [vmem:[%s2452_s26 + $0x8] sm:$0xff]  ;;  %v1806_v28 = vld [vmem:[%s2452_s26 + $0x18] sm:$0xff] }
  0x49   : > { %585 = vmatpush.bf16.msra.mxu0 %v1773_v10  ;;  %888 = vmatpush.bf16.msra.mxu2 %v1824_v50  ;;  %v1811_v10 = vld [vmem:[#allocation8] sm:$0xff]  ;;  %v1809_v52 = vld [vmem:[%s2452_s26 + $0x30] sm:$0xff] }
  0x4a   : > { %634 = vmatpush.bf16.msra.mxu1 %v1781_v11  ;;  %985 = vmatpush.bf16.msra.mxu3 %v1816_v59  ;;  %v1596_v11 = vld [vmem:[%s2409_s24 + $0x70] sm:$0xf]  ;;  %v1807_v36 = vld [vmem:[%s2452_s26 + $0x20] sm:$0xff] }
  0x4d   : > { %586 = vmatpush.bf16.msra.mxu0 %v1772_v12  ;;  %889 = vmatpush.bf16.msra.mxu2 %v1823_v55  ;;  %v1802_v12 = vld [vmem:[%s2409_s24 + $0x74] sm:$0xf0] }
  0x4e   : > { %635 = vmatpush.bf16.msra.mxu1 %v1780_v13  ;;  %986 = vmatpush.bf16.msra.mxu3 %v1815_v61  ;;  %v1801_v13 = vld [vmem:[%s2409_s24 + $0x74] sm:$0xf] }
  0x51   : > { %587 = vmatpush.bf16.msra.mxu0 %v1771_v14  ;;  %890 = vmatpush.bf16.msra.mxu2 %v1822_v58  ;;  %v1598_v14 = vld [vmem:[%s2409_s24 + $0x78] sm:$0xf0] }
  0x52   : > { %636 = vmatpush.bf16.msra.mxu1 %v1779_v15  ;;  %987 = vmatpush.bf16.msra.mxu3 %v1814_v63  ;;  %v1597_v15 = vor.u32 %v1802_v12, %v1596_v11  ;;  %v1601_v16 = vor.u32 %v1801_v13, %v1598_v14 }
  0x54   : > { %588 = vmatmul.bf16.vlgmr.msra.gmra.mxu0 %v1541_v20  ;;  %v1805_v20 = vld [vmem:[%s2452_s26 + $0x10] sm:$0xff] }
  0x55   : > { %637 = vmatmul.bf16.vlgmr.msra.gmra.mxu1 %v1545_v21  ;;  %891 = vmatpush.bf16.msra.mxu2 %v1821_v60  ;;  %v1810_v60 = vld [vmem:[%s2452_s26 + $0x38] sm:$0xff] }
  0x56   : > { %988 = vmatpush.bf16.msra.mxu3 %v1813_v7 }
  0x59   : > { %892 = vmatpush.bf16.msra.mxu2 %v1820_v62 }
  0x5a   : > { %989 = vmatpush.bf16.msra.mxu3 %v1812_v9 }
  0x5d   : > { %893 = vmatpush.bf16.msra.mxu2 %v1819_v6 }
  0x5e   : > { %990 = vmatpush.bf16.msra.mxu3 %v1811_v10 }
  0x60   : > { %894 = vmatmul.bf16.vlgmr.msra.gmra.mxu2 %v1803_v8 }
  0x64   : > { %593 = vmatmul.bf16.gmra.mxu0 %v1549_v26 }
  0x65   : > { %642 = vmatmul.bf16.gmra.mxu1 %v1553_v27 }
  0x70   : > { %899 = vmatmul.bf16.gmra.mxu2 %v1804_v17 }
  0x74   : > { %598 = vmatmul.bf16.gmra.mxu0 %v1557_v32 }
  0x75   : > { %647 = vmatmul.bf16.gmra.mxu1 %v1561_v33 }
  0x80   : > { %904 = vmatmul.bf16.gmra.mxu2 %v1805_v20 }
  0x84   : > { %603 = vmatmul.bf16.gmra.mxu0 %v1565_v38 }
  0x85   : > { %652 = vmatmul.bf16.gmra.mxu1 %v1569_v39 }
  0x90   : > { %909 = vmatmul.bf16.gmra.mxu2 %v1806_v28 }
  0x94   : > { %608 = vmatmul.bf16.gmra.mxu0 %v1573_v44  ;;  %v1808_v44 = vld [vmem:[%s2452_s26 + $0x28] sm:$0xff] }
  0x95   : > { %657 = vmatmul.bf16.gmra.mxu1 %v1577_v45 }
  0xa0   : > { %914 = vmatmul.bf16.gmra.mxu2 %v1807_v36 }
  0xa4   : > { %613 = vmatmul.bf16.gmra.mxu0 %v1581_v56 }
  0xa5   : > { %662 = vmatmul.bf16.gmra.mxu1 %v1585_v57 }
  0xb0   : > { %919 = vmatmul.bf16.gmra.mxu2 %v1808_v44 }
  0xb4   : > { %618 = vmatmul.bf16.gmra.mxu0 %v1589_v4 }
  0xb5   : > { %667 = vmatmul.bf16.gmra.mxu1 %v1593_v5 }
  0xc0   : > { %924 = vmatmul.bf16.gmra.mxu2 %v1809_v52 }
  0xc4   : > { %623 = vmatmul.bf16.gmra.mxu0 %v1597_v15 }
  0xc5   : > { %672 = vmatmul.bf16.gmra.mxu1 %v1601_v16 }
  0xd0   : > { %929 = vmatmul.bf16.gmra.mxu2 %v1810_v60 }
  0xd1   : > { %v589_v18 = vpop.f32.mrf.mxu0 }
  0xd2   : > { %v638_v19 = vpop.f32.mrf.mxu1 }
  0xd3   : > { %v639_v23 = vadd.f32 %v638_v19, %v589_v18  ;;  %v2469_v19 = vld [vmem:[%s2647_s4] ss:$0 sm:$0xff] }
  0xd9   : > { %v591_v21 = vpop.f32.mrf.mxu0 }
  0xda   : > { %v640_v22 = vpop.f32.mrf.mxu1 }
  0xdb   : > { %v641_v24 = vadd.f32 %v640_v22, %v591_v21 }
  0xdd   : > { %v750_v25 = vpack.c.bf16 %v641_v24, %v639_v23 }
  0xdf   : > { %991 = vmatmul.bf16.vlgmr.msra.gmra.mxu3 %v750_v25 }
  0xe1   : > { %v594_v26 = vpop.f32.mrf.mxu0 }
  0xe2   : > { %v643_v27 = vpop.f32.mrf.mxu1 }
  0xe3   : > { %v644_v31 = vadd.f32 %v643_v27, %v594_v26  ;;  %v895_v11 = vpop.f32.mrf.mxu2 }
  0xe9   : > { %v596_v29 = vpop.f32.mrf.mxu0 }
  0xea   : > { %v645_v30 = vpop.f32.mrf.mxu1 }
  0xeb   : > { %v646_v32 = vadd.f32 %v645_v30, %v596_v29  ;;  %v897_v17 = vpop.f32.mrf.mxu2 }
  0xed   : > { %v751_v33 = vpack.c.bf16 %v646_v32, %v644_v31 }
  0xef   : > { %996 = vmatmul.bf16.gmra.mxu3 %v751_v33 }
  0xf1   : > { %v599_v34 = vpop.f32.mrf.mxu0 }
  0xf2   : > { %v648_v35 = vpop.f32.mrf.mxu1 }
  0xf3   : > { %v649_v39 = vadd.f32 %v648_v35, %v599_v34  ;;  %v900_v18 = vpop.f32.mrf.mxu2 }
  0xf9   : > { %v601_v37 = vpop.f32.mrf.mxu0 }
  0xfa   : > { %v650_v38 = vpop.f32.mrf.mxu1 }
  0xfb   : > { %v651_v40 = vadd.f32 %v650_v38, %v601_v37  ;;  %v902_v22 = vpop.f32.mrf.mxu2 }
  0xfd   : > { %v752_v41 = vpack.c.bf16 %v651_v40, %v649_v39 }
  0xff   : > { %1001 = vmatmul.bf16.gmra.mxu3 %v752_v41 }
 0x101   : > { %v604_v42 = vpop.f32.mrf.mxu0 }
 0x102   : > { %v653_v43 = vpop.f32.mrf.mxu1 }
 0x103   : > { %v654_v47 = vadd.f32 %v653_v43, %v604_v42  ;;  %v905_v29 = vpop.f32.mrf.mxu2 }
 0x109   : > { %v606_v45 = vpop.f32.mrf.mxu0 }
 0x10a   : > { %v655_v46 = vpop.f32.mrf.mxu1 }
 0x10b   : > { %v656_v48 = vadd.f32 %v655_v46, %v606_v45  ;;  %v907_v38 = vpop.f32.mrf.mxu2 }
 0x10d   : > { %v753_v49 = vpack.c.bf16 %v656_v48, %v654_v47 }
 0x10f   : > { %1006 = vmatmul.bf16.gmra.mxu3 %v753_v49 }
 0x111   : > { %v609_v50 = vpop.f32.mrf.mxu0 }
 0x112   : > { %v658_v51 = vpop.f32.mrf.mxu1 }
 0x113   : > { %v659_v55 = vadd.f32 %v658_v51, %v609_v50 }
 0x119   : > { %v611_v53 = vpop.f32.mrf.mxu0 }
 0x11a   : > { %v660_v54 = vpop.f32.mrf.mxu1 }
 0x11b   : > { %v661_v56 = vadd.f32 %v660_v54, %v611_v53 }
 0x11d   : > { %v754_v57 = vpack.c.bf16 %v661_v56, %v659_v55  ;;  %v910_v55 = vpop.f32.mrf.mxu2 }
 0x11f   : > { %1011 = vmatmul.bf16.gmra.mxu3 %v754_v57 }
 0x121   : > { %v614_v58 = vpop.f32.mrf.mxu0 }
 0x122   : > { %v663_v59 = vpop.f32.mrf.mxu1 }
 0x123   : > { %v664_v63 = vadd.f32 %v663_v59, %v614_v58 }
 0x129   : > { %v616_v61 = vpop.f32.mrf.mxu0 }
 0x12a   : > { %v665_v62 = vpop.f32.mrf.mxu1 }
 0x12b   : > { %v666_v0 = vadd.f32 %v665_v62, %v616_v61 }
 0x12d   : > { %v755_v1 = vpack.c.bf16 %v666_v0, %v664_v63 }
 0x12f   : > { %1016 = vmatmul.bf16.gmra.mxu3 %v755_v1 }
 0x131   : > { %v619_v2 = vpop.f32.mrf.mxu0 }
 0x132   : > { %v668_v3 = vpop.f32.mrf.mxu1 }
 0x133   : > { %v669_v6 = vadd.f32 %v668_v3, %v619_v2 }
 0x139   : > { %v621_v4 = vpop.f32.mrf.mxu0 }
 0x13a   : > { %v670_v5 = vpop.f32.mrf.mxu1 }
 0x13b   : > { %v671_v7 = vadd.f32 %v670_v5, %v621_v4 }
 0x13d   : > { %v756_v8 = vpack.c.bf16 %v671_v7, %v669_v6 }
 0x13f   : > { %1021 = vmatmul.bf16.gmra.mxu3 %v756_v8 }
 0x141   : > { %v624_v9 = vpop.f32.mrf.mxu0 }
 0x142   : > { %v673_v10 = vpop.f32.mrf.mxu1 }
 0x143   : > { %v674_v14 = vadd.f32 %v673_v10, %v624_v9 }
 0x149   : > { %v626_v12 = vpop.f32.mrf.mxu0 }
 0x14a   : > { %v675_v13 = vpop.f32.mrf.mxu1 }
 0x14b   : > { %v676_v15 = vadd.f32 %v675_v13, %v626_v12 }
 0x14d   : > { %v757_v16 = vpack.c.bf16 %v676_v15, %v674_v14 }
 0x14f   : > { %1026 = vmatmul.bf16.gmra.mxu3 %v757_v16 }
 0x162   : > { %v992_v20 = vpop.f32.mrf.mxu3 }
 0x163   : > { %v993_v21 = vadd.f32 %v992_v20, %v895_v11 }
 0x165   : > { %v1036_v23 = vadd.f32 %v2469_v19, %v993_v21 }
 0x167   : > { %v1052_v24 = vsub.f32 0.0, %v1036_v23 }
 0x169   : > { %v1068_v25 = vmul.f32 1.442695, %v1052_v24 }
 0x16a   : > { %v994_v26 = vpop.f32.mrf.mxu3 }
 0x16b   : > { %1975 = vpow2.f32 %v1068_v25  ;;  %v995_v27 = vadd.f32 %v994_v26, %v897_v17  ;;  %v912_v17 = vpop.f32.mrf.mxu2 }
 0x16d   : > { %v1037_v28 = vadd.f32 %v2469_v19, %v995_v27 }
 0x16f   : > { %v1053_v30 = vsub.f32 0.0, %v1037_v28 }
 0x171   : > { %v1976_v31 = vpop.eup %1975  ;;  %v1070_v32 = vmul.f32 1.442695, %v1053_v30 }
 0x172   : > { %v1100_v33 = vadd.f32 1.0, %v1976_v31  ;;  %v997_v34 = vpop.f32.mrf.mxu3 }
 0x173   : > { %1977 = vpow2.f32 %v1070_v32  ;;  %v998_v35 = vadd.f32 %v997_v34, %v900_v18 }
 0x174   : > { %1979 = vrcp.f32 %v1100_v33  ;;  %vm1121_vm1 = vweird.f32 %v1100_v33  ;;  %v1125_v60 = vand.u32 2147483647, %v1100_v33  ;;  %v1127_v61 = vand.u32 2147483648, %v1100_v33 }
 0x175   : > { %v1038_v36 = vadd.f32 %v2469_v19, %v998_v35 }
 0x176   : > { %vm1126_vm5 = vcmp.eq.f32.partialorder %v1125_v60, 8.507059e+37  ;;  %v1128_v8 = vor.u32 1.1754944e-38, %v1127_v61 }
 0x177   : > { %v1054_v37 = vsub.f32 0.0, %v1038_v36 }
 0x179   : > { %v1978_v39 = vpop.eup %1977  ;;  %v1072_v40 = vmul.f32 1.442695, %v1054_v37 }
 0x17a   : > { %v1980_v41 = vpop.eup %1979  ;;  %v1101_v42 = vadd.f32 1.0, %v1978_v39  ;;  %v999_v43 = vpop.f32.mrf.mxu3 }
 0x17b   : > { %v1117_v44 = vmul.f32 %v1980_v41, %v1100_v33  ;;  %1981 = vpow2.f32 %v1072_v40  ;;  %v1000_v45 = vadd.f32 %v999_v43, %v902_v22  ;;  %vm1122_vm0 = vweird.f32 %v1980_v41  ;;  %v915_v39 = vpop.f32.mrf.mxu2 }
 0x17c   : > { %1983 = vrcp.f32 %v1101_v42  ;;  %v1142_v62 = vand.u32 2147483648, %v1101_v42  ;;  %v1140_v0 = vand.u32 2147483647, %v1101_v42  ;;  %vm2479_vm3 = vmor %vm1121_vm1, %vm1122_vm0  ;;  %vm1136_vm4 = vweird.f32 %v1101_v42 }
 0x17d   : > { %v1118_v46 = vsub.f32 1.0, %v1117_v44  ;;  %v1039_v47 = vadd.f32 %v2469_v19, %v1000_v45 }
 0x17e   : > { %v1143_v9 = vor.u32 1.1754944e-38, %v1142_v62  ;;  %vm1141_vm7 = vcmp.eq.f32.partialorder %v1140_v0, 8.507059e+37 }
 0x17f   : > { %v1055_v48 = vsub.f32 0.0, %v1039_v47  ;;  %v1119_v50 = vmul.f32 %v1980_v41, %v1118_v46 }
 0x181   : > { %v1982_v49 = vpop.eup %1981  ;;  %v1074_v51 = vmul.f32 1.442695, %v1055_v48  ;;  %v1120_v57 = vadd.f32 %v1980_v41, %v1119_v50 }
 0x182   : > { %v1984_v52 = vpop.eup %1983  ;;  %v2475_v53 = vadd.f32 1.0, %v1982_v49  ;;  %v1002_v54 = vpop.f32.mrf.mxu3 }
 0x183   : > { %v1132_v56 = vmul.f32 %v1984_v52, %v1101_v42  ;;  %1985 = vpow2.f32 %v1074_v51  ;;  %v1003_v59 = vadd.f32 %v1002_v54, %v905_v29  ;;  %vm1137_vm2 = vweird.f32 %v1984_v52  ;;  %v917_v60 = vpop.f32.mrf.mxu2 }
 0x184   : > { %1987 = vrcp.f32 %v2475_v53  ;;  %v1124_v4 = vsel %vm2479_vm3, %v1980_v41, %v1120_v57  ;;  %vm1138_vm6 = vmor %vm1136_vm4, %vm1137_vm2  ;;  %vm1151_vm8 = vweird.f32 %v2475_v53  ;;  %v1155_v30 = vand.u32 2147483647, %v2475_v53 }
 0x185   : > { %v1133_v58 = vsub.f32 1.0, %v1132_v56  ;;  %v1040_v1 = vadd.f32 %v2469_v19, %v1003_v59  ;;  %v1129_v15 = vsel %vm1126_vm5, %v1128_v8, %v1124_v4  ;;  %v1157_v36 = vand.u32 2147483648, %v2475_v53 }
 0x186   : > { %vm1156_vm13 = vcmp.eq.f32.partialorder %v1155_v30, 8.507059e+37 }
 0x187   : > { %v1134_v63 = vmul.f32 %v1984_v52, %v1133_v58  ;;  %v1056_v6 = vsub.f32 0.0, %v1040_v1  ;;  %v1158_v46 = vor.u32 1.1754944e-38, %v1157_v36 }
 0x189   : > { %v1986_v3 = vpop.eup %1985  ;;  %v1135_v5 = vadd.f32 %v1984_v52, %v1134_v63  ;;  %v1076_v14 = vmul.f32 1.442695, %v1056_v6 }
 0x18a   : > { %v2486_v7 = vpop.eup %1987  ;;  %v1103_v10 = vadd.f32 1.0, %v1986_v3  ;;  %v1004_v11 = vpop.f32.mrf.mxu3 }
 0x18b   : > { %v1139_v12 = vsel %vm1138_vm6, %v1984_v52, %v1135_v5  ;;  %v1147_v13 = vmul.f32 %v2486_v7, %v2475_v53  ;;  %v1005_v21 = vadd.f32 %v1004_v11, %v907_v38  ;;  %vm1152_vm9 = vweird.f32 %v2486_v7 }
 0x18c   : > { %v1144_v16 = vsel %vm1141_vm7, %v1143_v9, %v1139_v12  ;;  %1989 = vrcp.f32 %v1103_v10  ;;  %v1170_v37 = vand.u32 2147483647, %v1103_v10  ;;  %v1172_v38 = vand.u32 2147483648, %v1103_v10  ;;  %vm2506_vm11 = vmor %vm1151_vm8, %vm1152_vm9 }
 0x18d   : > { %v1831_v18 = vpack.c.bf16 %v1144_v16, %v1129_v15  ;;  %v1148_v20 = vsub.f32 1.0, %v1147_v13  ;;  %1991 = vpow2.f32 %v1076_v14  ;;  %v1041_v22 = vadd.f32 %v2469_v19, %v1005_v21 }
 0x18e   : > { %vm1166_vm12 = vweird.f32 %v1103_v10  ;;  %v1173_v47 = vor.u32 1.1754944e-38, %v1172_v38  ;;  %vm1171_vm15 = vcmp.eq.f32.partialorder %v1170_v37, 8.507059e+37 }
 0x18f   : > { %1832 = vst [vmem:[%s2490_s15] sm:$0xff] %v1831_v18   ;;  %v1149_v23 = vmul.f32 %v2486_v7, %v1148_v20  ;;  %v1057_v25 = vsub.f32 0.0, %v1041_v22  ;;  %v920_v18 = vpop.f32.mrf.mxu2 }
 0x191   : > { %v1078_v32 = vmul.f32 1.442695, %v1057_v25  ;;  %v1150_v33 = vadd.f32 %v2486_v7, %v1149_v23 }
 0x192   : > { %v1990_v24 = vpop.eup %1989  ;;  %v1007_v26 = vpop.f32.mrf.mxu3 }
 0x193   : > { %v1992_v27 = vpop.eup %1991  ;;  %v1162_v28 = vmul.f32 %v1990_v24, %v1103_v10  ;;  %v1008_v29 = vadd.f32 %v1007_v26, %v910_v55  ;;  %vm1167_vm10 = vweird.f32 %v1990_v24  ;;  %v1154_v43 = vsel %vm2506_vm11, %v2486_v7, %v1150_v33 }
 0x194   : > { %v2497_v31 = vadd.f32 1.0, %v1992_v27  ;;  %vm1168_vm14 = vmor %vm1166_vm12, %vm1167_vm10  ;;  %v1159_v52 = vsel %vm1156_vm13, %v1158_v46, %v1154_v43 }
 0x195   : > { %v1163_v34 = vsub.f32 1.0, %v1162_v28  ;;  %v1042_v35 = vadd.f32 %v2469_v19, %v1008_v29 }
 0x196   : > { %1993 = vrcp.f32 %v2497_v31  ;;  %vm1181_vm0 = vweird.f32 %v2497_v31  ;;  %v1185_v8 = vand.u32 2147483647, %v2497_v31  ;;  %v1187_v14 = vand.u32 2147483648, %v2497_v31 }
 0x197   : > { %v1164_v40 = vmul.f32 %v1990_v24, %v1163_v34  ;;  %1995 = vpow2.f32 %v1078_v32  ;;  %v1058_v41 = vsub.f32 0.0, %v1042_v35  ;;  %v922_v42 = vpop.f32.mrf.mxu2 }
 0x198   : > { %v1188_v27 = vor.u32 1.1754944e-38, %v1187_v14  ;;  %vm1186_vm6 = vcmp.eq.f32.partialorder %v1185_v8, 8.507059e+37 }
 0x199   : > { %v1165_v44 = vadd.f32 %v1990_v24, %v1164_v40  ;;  %v1080_v45 = vmul.f32 1.442695, %v1058_v41 }
 0x19a   : > { %v1009_v48 = vpop.f32.mrf.mxu3 }
 0x19b   : > { %v1169_v49 = vsel %vm1168_vm14, %v1990_v24, %v1165_v44  ;;  %1997 = vpow2.f32 %v1080_v45  ;;  %v1010_v50 = vadd.f32 %v1009_v48, %v912_v17 }
 0x19c   : > { %v1994_v51 = vpop.eup %1993  ;;  %v1174_v53 = vsel %vm1171_vm15, %v1173_v47, %v1169_v49 }
 0x19d   : > { %v1996_v54 = vpop.eup %1995  ;;  %v1836_v55 = vpack.c.bf16 %v1174_v53, %v1159_v52  ;;  %v1177_v56 = vmul.f32 %v1994_v51, %v2497_v31  ;;  %v1043_v57 = vadd.f32 %v2469_v19, %v1010_v50  ;;  %vm1182_vm1 = vweird.f32 %v1994_v51 }
 0x19e   : > { %v1105_v58 = vadd.f32 1.0, %v1996_v54  ;;  %vm1183_vm3 = vmor %vm1181_vm0, %vm1182_vm1 }
 0x19f   : > { %1868 = vst [vmem:[%s2490_s15 + $0x8] sm:$0xff] %v1836_v55   ;;  %v1059_v59 = vsub.f32 0.0, %v1043_v57  ;;  %v1178_v62 = vsub.f32 1.0, %v1177_v56 }
 0x1a0   : > { %1999 = vrcp.f32 %v1105_v58  ;;  %v1200_v15 = vand.u32 2147483647, %v1105_v58  ;;  %v1202_v16 = vand.u32 2147483648, %v1105_v58  ;;  %vm1196_vm4 = vweird.f32 %v1105_v58 }
 0x1a1   : > { %v1998_v61 = vpop.eup %1997  ;;  %v1082_v63 = vmul.f32 1.442695, %v1059_v59  ;;  %v1179_v3 = vmul.f32 %v1994_v51, %v1178_v62 }
 0x1a2   : > { %v2516_v0 = vadd.f32 1.0, %v1998_v61  ;;  %v1012_v1 = vpop.f32.mrf.mxu3  ;;  %v1203_v28 = vor.u32 1.1754944e-38, %v1202_v16  ;;  %vm1201_vm7 = vcmp.eq.f32.partialorder %v1200_v15, 8.507059e+37 }
 0x1a3   : > { %2001 = vpow2.f32 %v1082_v63  ;;  %v1013_v2 = vadd.f32 %v1012_v1, %v915_v39  ;;  %v1180_v10 = vadd.f32 %v1994_v51, %v1179_v3 }
 0x1a4   : > { %2003 = vrcp.f32 %v2516_v0  ;;  %vm1211_vm9 = vweird.f32 %v2516_v0  ;;  %v1215_v46 = vand.u32 2147483647, %v2516_v0  ;;  %v1217_v47 = vand.u32 2147483648, %v2516_v0 }
 0x1a5   : > { %v1044_v4 = vadd.f32 %v2469_v19, %v1013_v2  ;;  %v1184_v23 = vsel %vm1183_vm3, %v1994_v51, %v1180_v10 }
 0x1a6   : > { %v2000_v5 = vpop.eup %1999  ;;  %v1189_v32 = vsel %vm1186_vm6, %v1188_v27, %v1184_v23  ;;  %vm1216_vm13 = vcmp.eq.f32.partialorder %v1215_v46, 8.507059e+37  ;;  %v1218_v57 = vor.u32 1.1754944e-38, %v1217_v47 }
 0x1a7   : > { %v1192_v6 = vmul.f32 %v2000_v5, %v1105_v58  ;;  %v1060_v7 = vsub.f32 0.0, %v1044_v4  ;;  %vm1197_vm2 = vweird.f32 %v2000_v5 }
 0x1a8   : > { %vm1198_vm5 = vmor %vm1196_vm4, %vm1197_vm2 }
 0x1a9   : > { %v2002_v9 = vpop.eup %2001  ;;  %v1193_v11 = vsub.f32 1.0, %v1192_v6  ;;  %v1084_v12 = vmul.f32 1.442695, %v1060_v7 }
 0x1aa   : > { %v2522_v13 = vpop.eup %2003  ;;  %v1107_v17 = vadd.f32 1.0, %v2002_v9  ;;  %v1014_v20 = vpop.f32.mrf.mxu3 }
 0x1ab   : > { %v1194_v21 = vmul.f32 %v2000_v5, %v1193_v11  ;;  %v1207_v22 = vmul.f32 %v2522_v13, %v2516_v0  ;;  %2005 = vpow2.f32 %v1084_v12  ;;  %v1015_v26 = vadd.f32 %v1014_v20, %v917_v60 }
 0x1ac   : > { %2007 = vrcp.f32 %v1107_v17  ;;  %vm1212_vm8 = vweird.f32 %v2522_v13  ;;  %v1232_v48 = vand.u32 2147483648, %v1107_v17  ;;  %v1230_v50 = vand.u32 2147483647, %v1107_v17 }
 0x1ad   : > { %v1195_v24 = vadd.f32 %v2000_v5, %v1194_v21  ;;  %v1208_v25 = vsub.f32 1.0, %v1207_v22  ;;  %v1045_v30 = vadd.f32 %v2469_v19, %v1015_v26  ;;  %vm2543_vm11 = vmor %vm1211_vm9, %vm1212_vm8  ;;  %vm1226_vm12 = vweird.f32 %v1107_v17 }
 0x1ae   : > { %v1233_v58 = vor.u32 1.1754944e-38, %v1232_v48  ;;  %vm1231_vm15 = vcmp.eq.f32.partialorder %v1230_v50, 8.507059e+37 }
 0x1af   : > { %v1199_v29 = vsel %vm1198_vm5, %v2000_v5, %v1195_v24  ;;  %v1209_v35 = vmul.f32 %v2522_v13, %v1208_v25  ;;  %v1061_v36 = vsub.f32 0.0, %v1045_v30  ;;  %v925_v5 = vpop.f32.mrf.mxu2 }
 0x1b0   : > { %v1204_v33 = vsel %vm1201_vm7, %v1203_v28, %v1199_v29 }
 0x1b1   : > { %v2006_v34 = vpop.eup %2005  ;;  %v1841_v31 = vpack.c.bf16 %v1204_v33, %v1189_v32  ;;  %v1086_v41 = vmul.f32 1.442695, %v1061_v36  ;;  %v1210_v43 = vadd.f32 %v2522_v13, %v1209_v35 }
 0x1b2   : > { %v2008_v37 = vpop.eup %2007  ;;  %v2531_v38 = vadd.f32 1.0, %v2006_v34  ;;  %v1017_v39 = vpop.f32.mrf.mxu3 }
 0x1b3   : > { %1869 = vst [vmem:[%s2490_s15 + $0x10] sm:$0xff] %v1841_v31   ;;  %v1222_v40 = vmul.f32 %v2008_v37, %v1107_v17  ;;  %v1018_v45 = vadd.f32 %v1017_v39, %v920_v18  ;;  %vm1227_vm10 = vweird.f32 %v2008_v37  ;;  %v1214_v53 = vsel %vm2543_vm11, %v2522_v13, %v1210_v43 }
 0x1b4   : > { %2009 = vrcp.f32 %v2531_v38  ;;  %vm1228_vm14 = vmor %vm1226_vm12, %vm1227_vm10  ;;  %v1219_v0 = vsel %vm1216_vm13, %v1218_v57, %v1214_v53  ;;  %vm1241_vm1 = vweird.f32 %v2531_v38  ;;  %v1245_v22 = vand.u32 2147483647, %v2531_v38 }
 0x1b5   : > { %v1223_v44 = vsub.f32 1.0, %v1222_v40  ;;  %2011 = vpow2.f32 %v1086_v41  ;;  %v1046_v51 = vadd.f32 %v2469_v19, %v1018_v45  ;;  %v1247_v23 = vand.u32 2147483648, %v2531_v38 }
 0x1b6   : > { %vm1246_vm5 = vcmp.eq.f32.partialorder %v1245_v22, 8.507059e+37 }
 0x1b7   : > { %v1224_v49 = vmul.f32 %v2008_v37, %v1223_v44  ;;  %v1062_v55 = vsub.f32 0.0, %v1046_v51  ;;  %v927_v25 = vpop.f32.mrf.mxu2  ;;  %v1248_v36 = vor.u32 1.1754944e-38, %v1247_v23 }
 0x1b9   : > { %v1225_v54 = vadd.f32 %v2008_v37, %v1224_v49  ;;  %v1088_v63 = vmul.f32 1.442695, %v1062_v55 }
 0x1ba   : > { %v2550_v56 = vpop.eup %2009  ;;  %v1019_v59 = vpop.f32.mrf.mxu3 }
 0x1bb   : > { %v2012_v60 = vpop.eup %2011  ;;  %v1229_v61 = vsel %vm1228_vm14, %v2008_v37, %v1225_v54  ;;  %v1237_v62 = vmul.f32 %v2550_v56, %v2531_v38  ;;  %v1020_v3 = vadd.f32 %v1019_v59, %v922_v42  ;;  %2013 = vpow2.f32 %v1088_v63 }
 0x1bc   : > { %v1234_v1 = vsel %vm1231_vm15, %v1233_v58, %v1229_v61  ;;  %v1109_v2 = vadd.f32 1.0, %v2012_v60  ;;  %vm1242_vm0 = vweird.f32 %v2550_v56 }
 0x1bd   : > { %v1846_v4 = vpack.c.bf16 %v1234_v1, %v1219_v0  ;;  %v1238_v6 = vsub.f32 1.0, %v1237_v62  ;;  %v1047_v7 = vadd.f32 %v2469_v19, %v1020_v3  ;;  %vm2566_vm3 = vmor %vm1241_vm1, %vm1242_vm0 }
 0x1be   : > { %2015 = vrcp.f32 %v1109_v2  ;;  %v1262_v24 = vand.u32 2147483648, %v1109_v2  ;;  %v1260_v27 = vand.u32 2147483647, %v1109_v2  ;;  %vm1256_vm4 = vweird.f32 %v1109_v2 }
 0x1bf   : > { %1870 = vst [vmem:[%s2490_s15 + $0x18] sm:$0xff] %v1846_v4   ;;  %v1063_v8 = vsub.f32 0.0, %v1047_v7  ;;  %v1239_v11 = vmul.f32 %v2550_v56, %v1238_v6  ;;  %v930_v50 = vpop.f32.mrf.mxu2 }
 0x1c0   : > { %v1263_v37 = vor.u32 1.1754944e-38, %v1262_v24  ;;  %vm1261_vm7 = vcmp.eq.f32.partialorder %v1260_v27, 8.507059e+37 }
 0x1c1   : > { %v2014_v10 = vpop.eup %2013  ;;  %v1090_v12 = vmul.f32 1.442695, %v1063_v8  ;;  %v1240_v18 = vadd.f32 %v2550_v56, %v1239_v11 }
 0x1c2   : > { %v1022_v9 = vpop.f32.mrf.mxu3  ;;  %v2557_v15 = vadd.f32 1.0, %v2014_v10 }
 0x1c3   : > { %v1023_v13 = vadd.f32 %v1022_v9, %v925_v5  ;;  %2017 = vpow2.f32 %v1090_v12  ;;  %v1244_v33 = vsel %vm2566_vm3, %v2550_v56, %v1240_v18 }
 0x1c4   : > { %v2016_v14 = vpop.eup %2015  ;;  %2019 = vrcp.f32 %v2557_v15  ;;  %v1249_v42 = vsel %vm1246_vm5, %v1248_v36, %v1244_v33  ;;  %vm1271_vm9 = vweird.f32 %v2557_v15  ;;  %v1275_v60 = vand.u32 2147483647, %v2557_v15 }
 0x1c5   : > { %v1252_v16 = vmul.f32 %v2016_v14, %v1109_v2  ;;  %v1048_v17 = vadd.f32 %v2469_v19, %v1023_v13  ;;  %vm1257_vm2 = vweird.f32 %v2016_v14  ;;  %v1277_v61 = vand.u32 2147483648, %v2557_v15 }
 0x1c6   : > { %vm1258_vm6 = vmor %vm1256_vm4, %vm1257_vm2  ;;  %vm1276_vm13 = vcmp.eq.f32.partialorder %v1275_v60, 8.507059e+37 }
 0x1c7   : > { %v1253_v20 = vsub.f32 1.0, %v1252_v16  ;;  %v1064_v21 = vsub.f32 0.0, %v1048_v17  ;;  %v1278_v10 = vor.u32 1.1754944e-38, %v1277_v61  ;;  %v932_v12 = vpop.f32.mrf.mxu2 }
 0x1c9   : > { %v1254_v26 = vmul.f32 %v2016_v14, %v1253_v20  ;;  %v1092_v28 = vmul.f32 1.442695, %v1064_v21  ;;  %v2018_v32 = vpop.eup %2017 }
 0x1ca   : > { %v1024_v30 = vpop.f32.mrf.mxu3  ;;  %v2573_v35 = vpop.eup %2019  ;;  %v1111_v38 = vadd.f32 1.0, %v2018_v32 }
 0x1cb   : > { %v1255_v34 = vadd.f32 %v2016_v14, %v1254_v26  ;;  %2021 = vpow2.f32 %v1092_v28  ;;  %v1025_v31 = vadd.f32 %v1024_v30, %v927_v25  ;;  %v1267_v40 = vmul.f32 %v2573_v35, %v2557_v15 }
 0x1cc   : > { %2023 = vrcp.f32 %v1111_v38  ;;  %vm1272_vm8 = vweird.f32 %v2573_v35  ;;  %v1292_v62 = vand.u32 2147483648, %v1111_v38  ;;  %v1290_v1 = vand.u32 2147483647, %v1111_v38 }
 0x1cd   : > { %v1259_v39 = vsel %vm1258_vm6, %v2016_v14, %v1255_v34  ;;  %v1049_v41 = vadd.f32 %v2469_v19, %v1025_v31  ;;  %v1268_v45 = vsub.f32 1.0, %v1267_v40  ;;  %vm2589_vm11 = vmor %vm1271_vm9, %vm1272_vm8  ;;  %vm1286_vm12 = vweird.f32 %v1111_v38 }
 0x1ce   : > { %v1264_v43 = vsel %vm1261_vm7, %v1263_v37, %v1259_v39  ;;  %v1293_v11 = vor.u32 1.1754944e-38, %v1292_v62  ;;  %vm1291_vm15 = vcmp.eq.f32.partialorder %v1290_v1, 8.507059e+37 }
 0x1cf   : > { %v1851_v44 = vpack.c.bf16 %v1264_v43, %v1249_v42  ;;  %v1065_v46 = vsub.f32 0.0, %v1049_v41  ;;  %v1269_v52 = vmul.f32 %v2573_v35, %v1268_v45 }
 0x1d1   : > { %v2022_v47 = vpop.eup %2021  ;;  %1871 = vst [vmem:[%s2490_s15 + $0x20] sm:$0xff] %v1851_v44   ;;  %v1094_v48 = vmul.f32 1.442695, %v1065_v46  ;;  %v1270_v57 = vadd.f32 %v2573_v35, %v1269_v52 }
 0x1d2   : > { %v2579_v49 = vadd.f32 1.0, %v2022_v47  ;;  %v1027_v51 = vpop.f32.mrf.mxu3  ;;  %v2024_v54 = vpop.eup %2023 }
 0x1d3   : > { %2025 = vpow2.f32 %v1094_v48  ;;  %v1028_v53 = vadd.f32 %v1027_v51, %v930_v50  ;;  %v1282_v55 = vmul.f32 %v2024_v54, %v1111_v38  ;;  %vm1287_vm10 = vweird.f32 %v2024_v54 }
 0x1d4   : > { %2027 = vrcp.f32 %v2579_v49  ;;  %v1274_v7 = vsel %vm2589_vm11, %v2573_v35, %v1270_v57  ;;  %vm1288_vm14 = vmor %vm1286_vm12, %vm1287_vm10  ;;  %vm1301_vm1 = vweird.f32 %v2579_v49  ;;  %v1307_v30 = vand.u32 2147483648, %v2579_v49 }
 0x1d5   : > { %v1050_v56 = vadd.f32 %v2469_v19, %v1028_v53  ;;  %v1283_v58 = vsub.f32 1.0, %v1282_v55  ;;  %v1279_v16 = vsel %vm1276_vm13, %v1278_v10, %v1274_v7 }
 0x1d6   : > { %v1308_v37 = vor.u32 1.1754944e-38, %v1307_v30 }
 0x1d7   : > { %v1066_v59 = vsub.f32 0.0, %v1050_v56  ;;  %v1284_v0 = vmul.f32 %v2024_v54, %v1283_v58 }
 0x1d9   : > { %v2026_v63 = vpop.eup %2025  ;;  %v1096_v2 = vmul.f32 1.442695, %v1066_v59  ;;  %v1285_v8 = vadd.f32 %v2024_v54, %v1284_v0 }
 0x1da   : > { %v2028_v3 = vpop.eup %2027  ;;  %v1113_v5 = vadd.f32 1.0, %v2026_v63  ;;  %v1029_v6 = vpop.f32.mrf.mxu3 }
 0x1db   : > { %v1297_v9 = vmul.f32 %v2028_v3, %v2579_v49  ;;  %2029 = vpow2.f32 %v1096_v2  ;;  %v1289_v13 = vsel %vm1288_vm14, %v2024_v54, %v1285_v8  ;;  %v1030_v15 = vadd.f32 %v1029_v6, %v932_v12 }
 0x1dc   : > { %2031 = vrcp.f32 %v1113_v5  ;;  %v1294_v17 = vsel %vm1291_vm15, %v1293_v11, %v1289_v13  ;;  %vm1302_vm0 = vweird.f32 %v2028_v3  ;;  %v1322_v32 = vand.u32 2147483648, %v1113_v5 }
 0x1dd   : > { %v1298_v14 = vsub.f32 1.0, %v1297_v9  ;;  %v1856_v18 = vpack.c.bf16 %v1294_v17, %v1279_v16  ;;  %v1051_v20 = vadd.f32 %v2469_v19, %v1030_v15  ;;  %v1305_v19 = vand.u32 2147483647, %v2579_v49  ;;  %vm1303_vm3 = vmor %vm1301_vm1, %vm1302_vm0 }
 0x1de   : > { %v1320_v34 = vand.u32 2147483647, %v1113_v5  ;;  %vm1316_vm4 = vweird.f32 %v1113_v5  ;;  %v1323_v38 = vor.u32 1.1754944e-38, %v1322_v32 }
 0x1df   : > { %1872 = vst [vmem:[%s2490_s15 + $0x28] sm:$0xff] %v1856_v18   ;;  %v1299_v22 = vmul.f32 %v2028_v3, %v1298_v14  ;;  %v1067_v23 = vsub.f32 0.0, %v1051_v20  ;;  %vm1306_vm6 = vcmp.eq.f32.partialorder %v1305_v19, 8.507059e+37 }
 0x1e0   : > { %vm1321_vm7 = vcmp.eq.f32.partialorder %v1320_v34, 8.507059e+37 }
 0x1e1   : > { %v2030_v21 = vpop.eup %2029  ;;  %v1098_v27 = vmul.f32 1.442695, %v1067_v23  ;;  %v1300_v28 = vadd.f32 %v2028_v3, %v1299_v22 }
 0x1e2   : > { %v2032_v24 = vpop.eup %2031  ;;  %v1114_v25 = vadd.f32 1.0, %v2030_v21 }
 0x1e3   : > { %v1312_v26 = vmul.f32 %v2032_v24, %v1113_v5  ;;  %vm1317_vm2 = vweird.f32 %v2032_v24  ;;  %v1304_v31 = vsel %vm1303_vm3, %v2028_v3, %v1300_v28 }
 0x1e4   : > { %2033 = vrcp.f32 %v1114_v25  ;;  %vm1318_vm5 = vmor %vm1316_vm4, %vm1317_vm2  ;;  %v1309_v42 = vsel %vm1306_vm6, %v1308_v37, %v1304_v31  ;;  %vm1331_vm9 = vweird.f32 %v1114_v25  ;;  %v1337_v52 = vand.u32 2147483648, %v1114_v25 }
 0x1e5   : > { %v1313_v29 = vsub.f32 1.0, %v1312_v26  ;;  %2035 = vpow2.f32 %v1098_v27  ;;  %v1335_v54 = vand.u32 2147483647, %v1114_v25 }
 0x1e6   : > { %v1338_v59 = vor.u32 1.1754944e-38, %v1337_v52 }
 0x1e7   : > { %v1314_v33 = vmul.f32 %v2032_v24, %v1313_v29  ;;  %vm1336_vm14 = vcmp.eq.f32.partialorder %v1335_v54, 8.507059e+37 }
 0x1e9   : > { %v1315_v35 = vadd.f32 %v2032_v24, %v1314_v33 }
 0x1ea   : > { %v2034_v36 = vpop.eup %2033 }
 0x1eb   : > { %v2036_v39 = vpop.eup %2035  ;;  %v1319_v40 = vsel %vm1318_vm5, %v2032_v24, %v1315_v35  ;;  %v1327_v41 = vmul.f32 %v2034_v36, %v1114_v25  ;;  %vm1332_vm8 = vweird.f32 %v2034_v36 }
 0x1ec   : > { %v1324_v43 = vsel %vm1321_vm7, %v1323_v38, %v1319_v40  ;;  %v1115_v44 = vadd.f32 1.0, %v2036_v39  ;;  %vm1333_vm11 = vmor %vm1331_vm9, %vm1332_vm8 }
 0x1ed   : > { %v1861_v45 = vpack.c.bf16 %v1324_v43, %v1309_v42  ;;  %v1328_v46 = vsub.f32 1.0, %v1327_v41 }
 0x1ee   : > { %2037 = vrcp.f32 %v1115_v44  ;;  %v1352_v53 = vand.u32 2147483648, %v1115_v44  ;;  %v1350_v56 = vand.u32 2147483647, %v1115_v44  ;;  %vm1346_vm12 = vweird.f32 %v1115_v44 }
 0x1ef   : > { %1873 = vst [vmem:[%s2490_s15 + $0x30] sm:$0xff] %v1861_v45   ;;  %v1329_v47 = vmul.f32 %v2034_v36, %v1328_v46 }
 0x1f0   : > { %v1353_v60 = vor.u32 1.1754944e-38, %v1352_v53  ;;  %vm1351_vm15 = vcmp.eq.f32.partialorder %v1350_v56, 8.507059e+37 }
 0x1f1   : > { %v1330_v50 = vadd.f32 %v2034_v36, %v1329_v47 }
 0x1f3   : > { %v1334_v57 = vsel %vm1333_vm11, %v2034_v36, %v1330_v50 }
 0x1f4   : > { %v2038_v48 = vpop.eup %2037  ;;  %v1339_v62 = vsel %vm1336_vm14, %v1338_v59, %v1334_v57 }
 0x1f5   : > { %v1342_v49 = vmul.f32 %v2038_v48, %v1115_v44  ;;  %vm1347_vm10 = vweird.f32 %v2038_v48 }
 0x1f6   : > { %vm1348_vm13 = vmor %vm1346_vm12, %vm1347_vm10 }
 0x1f7   : > { %v1343_v51 = vsub.f32 1.0, %v1342_v49 }
 0x1f9   : > { %v1344_v55 = vmul.f32 %v2038_v48, %v1343_v51 }
 0x1fb   : > { %v1345_v58 = vadd.f32 %v2038_v48, %v1344_v55 }
 0x1fd   : > { %v1349_v61 = vsel %vm1348_vm13, %v2038_v48, %v1345_v58 }
 0x1fe   : > { %v1354_v63 = vsel %vm1351_vm15, %v1353_v60, %v1349_v61 }
 0x1ff   : > { %v1866_v0 = vpack.c.bf16 %v1354_v63, %v1339_v62 }
 0x201   : > { %1874 = vst [vmem:[%s2490_s15 + $0x38] sm:$0xff] %v1866_v0  }
 0x202   : > { %2186 = shalt.err (!%p2183_p0)
}
 0x203   : > { %s2258_s10 = smov 64   ;;  %s2259_s28 = smov 4  }
 0x204   : > { %1889 = dma.vmem_to_hbm [thread:$0]  (%p2385_p5), %s1402_s21, 1024, %s1404_s12, %s1389_s27, %s2258_s10, %s2258_s10, %s2259_s28  }
 0x205 PF: > { %s1418_s8 = sand.u32 1, %s2229_s18   ;;  %p1906_p3 = pnand %p1527_p11, %p2339_p6 }
 0x206   : > { %s1419_s13 = scalar_lea.sflag [#allocation5], %s1418_s8 }
 0x207   : > { %p1907_p7 = pneg %p1906_p3 }
 0x209   : > { %2224 = dma.done.wait (%p1907_p7), %s1419_s13, 1024  }
 0x20a   : > { %2226 = vsyncadd (%p1907_p7), %s1419_s13, 4294966272  ;;  %s23_s23 = sadd.s32 1, %s2249_s23   ;;  %s2673_s18 = smov %s2233_s19 }
 0x20b   : > { %p20_p9 = scmp.ge.s32.totalorder %s23_s23, 4   ;;  %s2674_s19 = smov %s2237_s20 }
 0x20c   : > { %s2675_s20 = smov %s2394_s17  ;;  %s2676_s21 = smov %s2245_s22 }
 0x20d   : > { %s2677_s22 = smov %s2679_s7  ;;  %22 = sbr.rel (!%p20_p9) target bundleno = 12 (0xc), region = 107 }
 0x212   :  { %1425 = vsyncpa [#allocation4], 1 }
 0x213   :  { %1427 = vsyncpa [#allocation4 + $0x1], 1 }
 0x214   :  { %1428 = vsyncpa [#allocation7], 1 }
 0x215   :  { %1429 = vsyncpa [#allocation10], 1 }
 0x216   :  { %1430 = vsyncpa [#allocation5], 1 }
 0x217   :  { %1432 = vsyncpa [#allocation5 + $0x1], 1 }

</bundles_post_ra>
